<compile_context>
chip_gen: v6e
topology: v6e:2x2x1
jax: 0.10.0
libtpu: 0.0.40
codegen_flags: <defaults>
</compile_context>

<pallas_src>
import functools

import jax
import jax.numpy as jnp
from jax.experimental import pallas as pl
from jax.experimental.pallas import tpu as pltpu


def attention_kernel(enc_ref, hproj_ref, w_e_ref, v_ref, mask_ref, out_ref, *, src_len):
    # enc_ref  : [TB, S_pad, 2E] bf16   batch-first encoder outputs, S padded to mult. of 128
    # hproj_ref: [TB, D]         f32    hidden @ W_h^T + b  (computed once per batch row)
    # w_e_ref  : [2E, D]         bf16   encoder-side weight, pre-transposed to [K, N]
    # v_ref    : [1, D]          f32
    # mask_ref : [TB, S_pad]     int32  (0 = padded source position)
    # out_ref  : [TB, S_pad]     f32    softmax attention weights
    TB, S_pad, E2 = enc_ref.shape
    D = w_e_ref.shape[1]

    # Encoder-side projection on the MXU (bf16 inputs, f32 accumulate).
    # S_pad % 8 == 0, so collapsing (TB, S_pad) does not cross (8, 128) tile boundaries.
    enc2d = enc_ref[...].reshape(TB * S_pad, E2)
    proj = jnp.dot(enc2d, w_e_ref[...], preferred_element_type=jnp.float32)
    proj = proj.reshape(TB, S_pad, D)

    # energy = tanh(enc_proj + hidden_proj)   (bias already folded into hidden_proj)
    energy = jnp.tanh(proj + hproj_ref[...][:, None, :])                 # [TB, S_pad, D] f32

    # scores: VPU multiply + lane reduce instead of an N=1 MXU matmul.
    att = jnp.sum(energy * v_ref[...].reshape(1, 1, D), axis=-1)         # [TB, S_pad] f32

    # masked_fill(mask == 0, -1e10), matching the PyTorch module.
    att = jnp.where(mask_ref[...] == 0, jnp.float32(-1e10), att)

    # S-padding lanes -> -inf so exp() is exactly 0 and they never enter the normalization
    # (keeps the fully-masked-row case identical to PyTorch: uniform over the real S).
    col = jax.lax.broadcasted_iota(jnp.int32, (TB, S_pad), 1)
    att = jnp.where(col >= src_len, jnp.float32(-jnp.inf), att)

    # numerically stable softmax over src_len (lane axis)
    m = jnp.max(att, axis=1, keepdims=True)
    e = jnp.exp(att - m)
    out_ref[...] = e / jnp.sum(e, axis=1, keepdims=True)


def attention_forward(hidden, encoder_outputs, mask, w_attn, b_attn, v_w):
    """hidden: [B, D_dec], encoder_outputs: [S, B, 2E], mask: [B, S] -> [B, S] softmax."""
    S, B, E2 = encoder_outputs.shape
    D_dec = hidden.shape[-1]
    D = w_attn.shape[0]
    S_pad = pl.cdiv(S, 128) * 128

    # Split W_attn by the concat order torch.cat((hidden, encoder_outputs), dim=2):
    # first D_dec input columns act on hidden, the remaining 2E on encoder outputs.
    w_h = w_attn[:, :D_dec]                                   # [D, D_dec]
    w_e = w_attn[:, D_dec:]                                   # [D, 2E]

    # Hidden-side projection + bias computed once per batch row (no repeat over S).
    hproj = (hidden.astype(jnp.float32) @ w_h.astype(jnp.float32).T
             + b_attn.astype(jnp.float32))                    # [B, D] f32

    # Encoder outputs: batch-first, lane-dense pad of S, bf16 for the MXU (one fused pass).
    enc_bf = jnp.transpose(encoder_outputs, (1, 0, 2))        # [B, S, 2E]
    enc_bf = jnp.pad(enc_bf, ((0, 0), (0, S_pad - S), (0, 0))).astype(jnp.bfloat16)
    w_e_t = w_e.T.astype(jnp.bfloat16)                        # [2E, D]  (pre-transposed)
    mask_p = jnp.pad(mask.astype(jnp.int32), ((0, 0), (0, S_pad - S)))
    v_f = v_w.astype(jnp.float32)                             # [1, D]

    # Batch tile: largest convenient tile; multiple of 8 (or the full B) keeps the
    # (8, 128) sublane constraint satisfied and VMEM bounded on v7x (64 MiB).
    TB = B if B <= 128 else 128
    nb = pl.cdiv(B, TB)

    kernel = functools.partial(attention_kernel, src_len=S)

    out_pad = pl.pallas_call(
        kernel,
        out_shape=jax.ShapeDtypeStruct((B, S_pad), jnp.float32),
        grid=(nb,),
        in_specs=[
            pl.BlockSpec((TB, S_pad, E2), lambda b: (b, 0, 0)),   # encoder tile
            pl.BlockSpec((TB, D), lambda b: (b, 0)),              # hidden projection
            pl.BlockSpec((E2, D), lambda b: (0, 0)),              # encoder-side weight
            pl.BlockSpec((1, D), lambda b: (0, 0)),               # v
            pl.BlockSpec((TB, S_pad), lambda b: (b, 0)),          # mask
        ],
        out_specs=pl.BlockSpec((TB, S_pad), lambda b: (b, 0)),
        compiler_params=pltpu.CompilerParams(
            dimension_semantics=("parallel",),       # shards batch tiles across TCs on v7x
            vmem_limit_bytes=48 * 1024 * 1024,       # headroom under v7x's 64 MiB VMEM
        ),
    )(enc_bf, hproj, w_e_t, v_f, mask_p)
    return out_pad[:, :S]


def reference_forward(hidden, encoder_outputs, mask, w_attn, b_attn, v_w):
    """Plain-JAX f32 reference mirroring the PyTorch forward."""
    S, B, _ = encoder_outputs.shape
    hidden_rep = jnp.broadcast_to(hidden[:, None, :], (B, S, hidden.shape[-1]))
    enc_bf = jnp.transpose(encoder_outputs, (1, 0, 2))
    cat = jnp.concatenate([hidden_rep, enc_bf], axis=2)
    energy = jnp.tanh(jnp.einsum("bsf,df->bsd", cat, w_attn) + b_attn[0])
    attention = jnp.einsum("bsd,d->bs", energy, v_w[0])
    attention = jnp.where(mask == 0, -1e10, attention)
    return jax.nn.softmax(attention, axis=1)


if __name__ == "__main__":
    # small, deterministic example consistent with the module
    enc_hid_dim = 16
    dec_hid_dim = 32
    batch = 2
    src_len = 8
    F = enc_hid_dim * 2 + dec_hid_dim  # 64

    key = jax.random.PRNGKey(0)
    k_h, k_e, k_w, k_b, k_v = jax.random.split(key, 5)

    hidden = jax.random.normal(k_h, (batch, dec_hid_dim), dtype=jnp.float32)
    encoder_outputs = jax.random.normal(
        k_e, (src_len, batch, enc_hid_dim * 2), dtype=jnp.float32
    )
    # mask: first row fully valid, second row has last 3 positions padded
    mask = jnp.ones((batch, src_len), dtype=jnp.int32)
    mask = mask.at[1, -3:].set(0)

    # deterministic parameter init (shapes from __init__)
    w_attn = jax.random.normal(k_w, (dec_hid_dim, F), dtype=jnp.float32) * 0.1
    b_attn = jax.random.normal(k_b, (1, dec_hid_dim), dtype=jnp.float32) * 0.1
    v_w = jax.random.normal(k_v, (1, dec_hid_dim), dtype=jnp.float32) * 0.1

    out = attention_forward(hidden, encoder_outputs, mask, w_attn, b_attn, v_w)
    out = jax.block_until_ready(out)

    ref = reference_forward(hidden, encoder_outputs, mask, w_attn, b_attn, v_w)
    assert out.shape == (batch, src_len)
    # rows sum to 1
    assert jnp.allclose(jnp.sum(out, axis=1), 1.0, atol=1e-5)
    # bf16 MXU inputs (f32 accumulate / f32 softmax) vs pure-f32 reference
    assert jnp.allclose(out, ref, atol=2e-3, rtol=2e-3), "mismatch vs reference"

    print("KERNEL_OK")
</pallas_src>

<mosaic_0001>
module attributes {stable_mosaic.version = 11 : i64} {
  func.func @attention_kernel(%arg0: i32, %arg1: memref<2x128x32xbf16, #tpu.memory_space<vmem>>, %arg2: memref<2x32xf32, #tpu.memory_space<vmem>>, %arg3: memref<32x32xbf16, #tpu.memory_space<vmem>>, %arg4: memref<1x32xf32, #tpu.memory_space<vmem>>, %arg5: memref<2x128xi32, #tpu.memory_space<vmem>>, %arg6: memref<2x128xf32, #tpu.memory_space<vmem>>) attributes {dimension_semantics = [#tpu.dimension_semantics<parallel>], iteration_bounds = array<i64: 1>, scalar_prefetch = 0 : i64, scratch_operands = 0 : i64, tpu.core_type = #tpu.core_type<tc>, window_params = [{transform_indices = @transform_0, window_bounds = array<i64: 2, 128, 32>}, {transform_indices = @transform_1, window_bounds = array<i64: 2, 32>}, {pipeline_mode = #tpu.pipeline_mode<synchronous>, transform_indices = @transform_2, window_bounds = array<i64: 32, 32>}, {pipeline_mode = #tpu.pipeline_mode<synchronous>, transform_indices = @transform_3, window_bounds = array<i64: 1, 32>}, {transform_indices = @transform_4, window_bounds = array<i64: 2, 128>}, {transform_indices = @transform_5, window_bounds = array<i64: 2, 128>}]} {
    %c0 = arith.constant 0 : index
    %c0_0 = arith.constant 0 : index
    %c0_1 = arith.constant 0 : index
    %0 = vector.load %arg1[%c0, %c0_0, %c0_1] : memref<2x128x32xbf16, #tpu.memory_space<vmem>>, vector<2x128x32xbf16>
    %1 = vector.shape_cast %0 : vector<2x128x32xbf16> to vector<256x32xbf16>
    %c0_2 = arith.constant 0 : index
    %c0_3 = arith.constant 0 : index
    %2 = vector.load %arg3[%c0_2, %c0_3] : memref<32x32xbf16, #tpu.memory_space<vmem>>, vector<32x32xbf16>
    %cst = arith.constant dense<0.000000e+00> : vector<256x32xf32>
    %3 = tpu.matmul %1, %2, %cst {dimension_numbers = #tpu.dot_dimension_numbers<[1], [0], [0], [1], [0, 0, 1, 1], [], []>} : vector<256x32xbf16>, vector<32x32xbf16>, vector<256x32xf32> -> vector<256x32xf32>
    %4 = vector.shape_cast %3 : vector<256x32xf32> to vector<2x128x32xf32>
    %c0_4 = arith.constant 0 : index
    %c0_5 = arith.constant 0 : index
    %5 = vector.load %arg2[%c0_4, %c0_5] : memref<2x32xf32, #tpu.memory_space<vmem>>, vector<2x32xf32>
    %6 = vector.shape_cast %5 : vector<2x32xf32> to vector<2x1x32xf32>
    %7 = vector.broadcast %6 : vector<2x1x32xf32> to vector<2x128x32xf32>
    %8 = arith.addf %4, %7 : vector<2x128x32xf32>
    %9 = math.tanh %8 : vector<2x128x32xf32>
    %c0_6 = arith.constant 0 : index
    %c0_7 = arith.constant 0 : index
    %10 = vector.load %arg4[%c0_6, %c0_7] : memref<1x32xf32, #tpu.memory_space<vmem>>, vector<1x32xf32>
    %11 = vector.shape_cast %10 : vector<1x32xf32> to vector<1x1x32xf32>
    %12 = vector.broadcast %11 : vector<1x1x32xf32> to vector<2x128x32xf32>
    %13 = arith.mulf %9, %12 : vector<2x128x32xf32>
    %cst_8 = arith.constant dense<0.000000e+00> : vector<2x128xf32>
    %14 = vector.multi_reduction <add>, %13, %cst_8 [2] : vector<2x128x32xf32> to vector<2x128xf32>
    %c0_9 = arith.constant 0 : index
    %c0_10 = arith.constant 0 : index
    %15 = vector.load %arg5[%c0_9, %c0_10] : memref<2x128xi32, #tpu.memory_space<vmem>>, vector<2x128xi32>
    %c0_i32 = arith.constant 0 : i32
    %16 = vector.broadcast %c0_i32 : i32 to vector<2x128xi32>
    %17 = arith.cmpi eq, %15, %16 : vector<2x128xi32>
    %cst_11 = arith.constant -1.000000e+10 : f32
    %18 = vector.broadcast %cst_11 : f32 to vector<2x128xf32>
    %19 = arith.select %17, %18, %14 : vector<2x128xi1>, vector<2x128xf32>
    %20 = tpu.iota {dimensions = array<i32: 1>} : vector<2x128xi32>
    %c8_i32 = arith.constant 8 : i32
    %21 = vector.broadcast %c8_i32 : i32 to vector<2x128xi32>
    %22 = arith.cmpi sge, %20, %21 : vector<2x128xi32>
    %cst_12 = arith.constant 0xFF800000 : f32
    %23 = vector.broadcast %cst_12 : f32 to vector<2x128xf32>
    %24 = arith.select %22, %23, %19 : vector<2x128xi1>, vector<2x128xf32>
    %cst_13 = arith.constant dense<0xFF800000> : vector<2xf32>
    %25 = vector.multi_reduction <maximumf>, %24, %cst_13 [1] : vector<2x128xf32> to vector<2xf32>
    %26 = vector.shape_cast %25 : vector<2xf32> to vector<2x1xf32>
    %27 = vector.broadcast %26 : vector<2x1xf32> to vector<2x128xf32>
    %28 = arith.subf %24, %27 : vector<2x128xf32>
    %29 = math.exp %28 : vector<2x128xf32>
    %cst_14 = arith.constant dense<0.000000e+00> : vector<2xf32>
    %30 = vector.multi_reduction <add>, %29, %cst_14 [1] : vector<2x128xf32> to vector<2xf32>
    %31 = vector.shape_cast %30 : vector<2xf32> to vector<2x1xf32>
    %32 = vector.broadcast %31 : vector<2x1xf32> to vector<2x128xf32>
    %33 = arith.divf %29, %32 : vector<2x128xf32>
    %c0_15 = arith.constant 0 : index
    %c0_16 = arith.constant 0 : index
    %34 = vector.load %arg6[%c0_15, %c0_16] : memref<2x128xf32, #tpu.memory_space<vmem>>, vector<2x128xf32>
    tpu.vector_store %arg6[%c0_15, %c0_16], %33 {strides = array<i32>} : memref<2x128xf32, #tpu.memory_space<vmem>>, vector<2x128xf32>,
    return
  }
  func.func @transform_0(%arg0: i32) -> (i32, i32, i32) {
    %c0_i32 = arith.constant 0 : i32
    %c0_i32_0 = arith.constant 0 : i32
    %c0_i32_1 = arith.constant 0 : i32
    return %arg0, %c0_i32, %c0_i32_0 : i32, i32, i32
  }
  func.func @transform_1(%arg0: i32) -> (i32, i32) {
    %c0_i32 = arith.constant 0 : i32
    %c0_i32_0 = arith.constant 0 : i32
    return %arg0, %c0_i32 : i32, i32
  }
  func.func @transform_2(%arg0: i32) -> (i32, i32) {
    %c0_i32 = arith.constant 0 : i32
    %c0_i32_0 = arith.constant 0 : i32
    %c0_i32_1 = arith.constant 0 : i32
    return %c0_i32, %c0_i32_0 : i32, i32
  }
  func.func @transform_3(%arg0: i32) -> (i32, i32) {
    %c0_i32 = arith.constant 0 : i32
    %c0_i32_0 = arith.constant 0 : i32
    %c0_i32_1 = arith.constant 0 : i32
    return %c0_i32, %c0_i32_0 : i32, i32
  }
  func.func @transform_4(%arg0: i32) -> (i32, i32) {
    %c0_i32 = arith.constant 0 : i32
    %c0_i32_0 = arith.constant 0 : i32
    return %arg0, %c0_i32 : i32, i32
  }
  func.func @transform_5(%arg0: i32) -> (i32, i32) {
    %c0_i32 = arith.constant 0 : i32
    %c0_i32_0 = arith.constant 0 : i32
    return %arg0, %c0_i32 : i32, i32
  }
}

</mosaic_0001>

<bundles_post_ra>
// kernel: tpu_custom_call.1
= control target key start
LH: loop header
LB: loop body
LE: loop exit
PB: predicated region body
PF: predicated region fallthrough
CT: control target
= control target key end

     0   :  { %vm150_vm0 = vcmask 261120   ;;  %s1347_s0 = inlined_call_operand.vmem [shape: bf16[2,128,32], index: 0, kind: input, shape index: {}]   ;;  %s1348_s1 = inlined_call_operand.vmem [shape: f32[2,32], index: 1, kind: input, shape index: {}]   ;;  %s1349_s2 = inlined_call_operand.vmem [shape: bf16[32,32], index: 2, kind: input, shape index: {}]   ;;  %s1350_s3 = inlined_call_operand.vmem [shape: f32[1,32], index: 3, kind: input, shape index: {}]   ;;  %s1351_s4 = inlined_call_operand.vmem [shape: s32[2,128], index: 4, kind: input, shape index: {}]   ;;  %s1352_s5 = inlined_call_operand.hbm [shape: f32[2,128], index: 5, kind: output, shape index: {}]  }
   0x1   :  { %v946_v0 = vld [vmem:[%s1349_s2 + $0x8] sm:$0xff]   ;;  %v947_v1 = vld [vmem:[%s1349_s2] sm:$0xff]   ;;  %v952_v6 = vld [vmem:[%s1347_s0 + $0x10] sm:$0xff]  }
   0x2   :  { %904 = vmatprep.subr.bf16.mxu0 %v946_v0  ;;  %940 = vmatprep.subr.bf16.mxu1 %v946_v0  ;;  %v948_v2 = vld [vmem:[%s1347_s0] sm:$0xff]   ;;  %v950_v4 = vld [vmem:[%s1347_s0 + $0x8] sm:$0xff]   ;;  %v953_v7 = vld [vmem:[%s1347_s0 + $0x50] sm:$0xff]  }
   0x3   :  { %905 = vmatpush3.bf16.msra.mxu0 %v946_v0  ;;  %942 = vmatpush3.bf16.msra.mxu1 %v946_v0  ;;  %v949_v3 = vld [vmem:[%s1347_s0 + $0x40] sm:$0xff]   ;;  %v951_v5 = vld [vmem:[%s1347_s0 + $0x48] sm:$0xff]   ;;  %v954_v8 = vld [vmem:[%s1347_s0 + $0x18] sm:$0xff]  }
   0x4   :  { %906 = vmatprep.subr.bf16.mxu0 %v947_v1  ;;  %941 = vmatprep.subr.bf16.mxu1 %v947_v1  ;;  %v955_v9 = vld [vmem:[%s1347_s0 + $0x58] sm:$0xff]   ;;  %v956_v10 = vld [vmem:[%s1347_s0 + $0x20] sm:$0xff]  }
   0x5   :  { %908 = vmatprep.mubr.msk.bf16.mxu0 %vm150_vm0, %v948_v2  ;;  %924 = vmatprep.mubr.msk.bf16.mxu1 %vm150_vm0, %v949_v3  ;;  %v957_v11 = vld [vmem:[%s1347_s0 + $0x60] sm:$0xff]  }
   0x7   :  { %907 = vmatpush3.bf16.msra.mxu0 %v947_v1  ;;  %943 = vmatpush3.bf16.msra.mxu1 %v947_v1 }
   0xa   :  { %909 = vmatmul.mubr.msk.bf16.vlgmr.msra.gmra.mxu0 %vm150_vm0, %v950_v4  ;;  %925 = vmatmul.mubr.msk.bf16.vlgmr.msra.gmra.mxu1 %vm150_vm0, %v951_v5 }
   0xb   :  { %912 = vmatprep.mubr.msk.bf16.mxu0 %vm150_vm0, %v952_v6  ;;  %928 = vmatprep.mubr.msk.bf16.mxu1 %vm150_vm0, %v953_v7 }
  0x12   :  { %913 = vmatmul.mubr.msk.bf16.gmra.mxu0 %vm150_vm0, %v954_v8  ;;  %929 = vmatmul.mubr.msk.bf16.gmra.mxu1 %vm150_vm0, %v955_v9 }
  0x13   :  { %10 = vsyncpa [#allocation3], 0  ;;  %916 = vmatprep.mubr.msk.bf16.mxu0 %vm150_vm0, %v956_v10  ;;  %932 = vmatprep.mubr.msk.bf16.mxu1 %vm150_vm0, %v957_v11  ;;  %v958_v12 = vld [vmem:[%s1347_s0 + $0x28] sm:$0xff]   ;;  %v960_v14 = vld [vmem:[%s1347_s0 + $0x30] sm:$0xff]   ;;  %v1054_v18 = vmov 1966171168   ;;  %v373_v20 = vlaneseq }
  0x14   :  { %v959_v13 = vld [vmem:[%s1347_s0 + $0x68] sm:$0xff]   ;;  %v961_v15 = vld [vmem:[%s1347_s0 + $0x70] sm:$0xff]   ;;  %v962_v16 = vld [vmem:[%s1347_s0 + $0x38] sm:$0xff]   ;;  %v371_v19 = vunpack.c.l.s4 %v1054_v18  ;;  %vm638_vm1 = vcmask 130112   ;;  %vm645_vm2 = vcmask 195712   ;;  %vm652_vm3 = vcmask 261312  }
  0x15   :  { %v963_v17 = vld [vmem:[%s1347_s0 + $0x78] sm:$0xff]   ;;  %v1157_v22 = vshrl.u32 %v373_v20, 7  ;;  %v884_v23 = vld.sshfl [vmem:[%s1348_s1] sm:$0x11 pattern:$0x75316420] }
  0x16   :  { %v372_v21 = vunpack.c.0.s8 %v371_v19  ;;  %v369_v25 = vcombine.high %v884_v23, %v884_v23  ;;  %v1181_v53 = vld [vmem:[%s1350_s3] ss:$0 sm:$0xff]  ;;  %vm659_vm4 = vcmask 326912   ;;  %vm666_vm5 = vcmask 392512  }
  0x17   :  { %v386_v27 = vsub.s32 0, %v1157_v22  ;;  %vm673_vm6 = vcmask 458112   ;;  %vm680_vm7 = vcmask 523712   ;;  %vm687_vm8 = vcmask 589312  }
  0x18   :  { %v375_v24 = vsub.s32 %v372_v21, %v1157_v22  ;;  %vm694_vm9 = vcmask 654912   ;;  %vm701_vm10 = vcmask 720512   ;;  %vm708_vm11 = vcmask 786112  }
  0x19   :  { %vm715_vm12 = vcmask 851712   ;;  %vm722_vm13 = vcmask 917312   ;;  %vm729_vm14 = vcmask 982912   ;;  %vm736_vm15 = vcmask 1048512  }
  0x1a   :  { %917 = vmatmul.mubr.msk.bf16.gmra.mxu0 %vm150_vm0, %v958_v12  ;;  %933 = vmatmul.mubr.msk.bf16.gmra.mxu1 %vm150_vm0, %v959_v13  ;;  %v376_v26 = vrot.slane %v884_v23, %v375_v24  ;;  %v383_v28 = vrot.slane %v369_v25, %v375_v24 }
  0x1b   :  { %920 = vmatprep.mubr.msk.bf16.mxu0 %vm150_vm0, %v960_v14  ;;  %936 = vmatprep.mubr.msk.bf16.mxu1 %vm150_vm0, %v961_v15 }
  0x1c   :  { %v1164_v29 = vrot.slane %v376_v26, %v386_v27  ;;  %v1166_v30 = vrot.slane %v383_v28, %v386_v27 }
  0x22   :  { %921 = vmatmul.mubr.msk.bf16.gmra.mxu0 %vm150_vm0, %v962_v16  ;;  %937 = vmatmul.mubr.msk.bf16.gmra.mxu1 %vm150_vm0, %v963_v17 }
  0xca   :  { %v910_v31 = vpop.f32.mrf.mxu0  ;;  %v926_v32 = vpop.f32.mrf.mxu1 }
  0xcb   :  { %v396_v33 = vadd.f32 %v910_v31, %v1164_v29  ;;  %v412_v34 = vadd.f32 %v926_v32, %v1166_v30 }
  0xcc   :  { %v233_v35 = vpop.f32.mrf.mxu0  ;;  %v297_v36 = vpop.f32.mrf.mxu1 }
  0xcd   :  { %964 = vtanh.f32 %v396_v33  ;;  %v394_v37 = vadd.f32 %v1164_v29, %v233_v35  ;;  %v410_v38 = vadd.f32 %v1166_v30, %v297_v36 }
  0xce   :  { %966 = vtanh.f32 %v412_v34  ;;  %v911_v39 = vpop.f32.mrf.mxu0  ;;  %v927_v40 = vpop.f32.mrf.mxu1 }
  0xcf   :  { %968 = vtanh.f32 %v394_v37  ;;  %v397_v41 = vadd.f32 %v911_v39, %v1164_v29  ;;  %v413_v42 = vadd.f32 %v927_v40, %v1166_v30 }
  0xd0   :  { %970 = vtanh.f32 %v410_v38  ;;  %v236_v43 = vpop.f32.mrf.mxu0  ;;  %v300_v44 = vpop.f32.mrf.mxu1 }
  0xd1   :  { %972 = vtanh.f32 %v397_v41  ;;  %v395_v45 = vadd.f32 %v1164_v29, %v236_v43  ;;  %v411_v46 = vadd.f32 %v1166_v30, %v300_v44 }
  0xd2   :  { %974 = vtanh.f32 %v413_v42  ;;  %v914_v47 = vpop.f32.mrf.mxu0  ;;  %v930_v49 = vpop.f32.mrf.mxu1 }
  0xd3   :  { %v400_v48 = vadd.f32 %v914_v47, %v1164_v29  ;;  %v416_v50 = vadd.f32 %v930_v49, %v1166_v30  ;;  %976 = vtanh.f32 %v395_v45 }
  0xd4   :  { %978 = vtanh.f32 %v411_v46  ;;  %v249_v51 = vpop.f32.mrf.mxu0  ;;  %v313_v52 = vpop.f32.mrf.mxu1 }
  0xd5   :  { %980 = vtanh.f32 %v400_v48  ;;  %v398_v54 = vadd.f32 %v1164_v29, %v249_v51  ;;  %v414_v56 = vadd.f32 %v1166_v30, %v313_v52 }
  0xd6   :  { %982 = vtanh.f32 %v416_v50  ;;  %v915_v57 = vpop.f32.mrf.mxu0  ;;  %v931_v59 = vpop.f32.mrf.mxu1 }
  0xd7   :  { %984 = vtanh.f32 %v398_v54  ;;  %v401_v0 = vadd.f32 %v915_v57, %v1164_v29  ;;  %v417_v4 = vadd.f32 %v931_v59, %v1166_v30 }
  0xd8   :  { %986 = vtanh.f32 %v414_v56  ;;  %v252_v5 = vpop.f32.mrf.mxu0  ;;  %v316_v9 = vpop.f32.mrf.mxu1 }
  0xd9   :  { %988 = vtanh.f32 %v401_v0  ;;  %v399_v11 = vadd.f32 %v1164_v29, %v252_v5  ;;  %v415_v16 = vadd.f32 %v1166_v30, %v316_v9 }
  0xda   :  { %v965_v55 = vpop.eup %964  ;;  %v918_v10 = vpop.f32.mrf.mxu0  ;;  %990 = vtanh.f32 %v417_v4 }
  0xdb   :  { %v967_v58 = vpop.eup %966  ;;  %v467_v60 = vmul.f32 %v965_v55, %v1181_v53  ;;  %v934_v13 = vpop.f32.mrf.mxu1  ;;  %v404_v21 = vadd.f32 %v918_v10, %v1164_v29  ;;  %992 = vtanh.f32 %v399_v11 }
  0xdc   :  { %v969_v61 = vpop.eup %968  ;;  %v483_v62 = vmul.f32 %v967_v58, %v1181_v53  ;;  %v420_v24 = vadd.f32 %v934_v13, %v1166_v30  ;;  %v265_v25 = vpop.f32.mrf.mxu0  ;;  %994 = vtanh.f32 %v415_v16 }
  0xdd   :  { %v971_v63 = vpop.eup %970  ;;  %v503_v1 = vsel %vm150_vm0, %v467_v60, 0.0  ;;  %v465_v2 = vmul.f32 %v969_v61, %v1181_v53  ;;  %v329_v27 = vpop.f32.mrf.mxu1  ;;  %996 = vtanh.f32 %v404_v21  ;;  %v402_v37 = vadd.f32 %v1164_v29, %v265_v25 }
  0xde   :  { %v973_v3 = vpop.eup %972  ;;  %v551_v6 = vsel %vm150_vm0, %v483_v62, 0.0  ;;  %504 = vadd.xlane.f32.xlu0 %v503_v1  ;;  %v481_v7 = vmul.f32 %v971_v63, %v1181_v53  ;;  %998 = vtanh.f32 %v420_v24  ;;  %v919_v35 = vpop.f32.mrf.mxu0  ;;  %v418_v41 = vadd.f32 %v1166_v30, %v329_v27 }
  0xdf   :  { %v975_v8 = vpop.eup %974  ;;  %552 = vadd.xlane.f32.xlu1 %v551_v6  ;;  %v497_v12 = vsel %vm150_vm0, %v465_v2, 0.0  ;;  %v468_v14 = vmul.f32 %v973_v3, %v1181_v53  ;;  %v935_v38 = vpop.f32.mrf.mxu1  ;;  %1000 = vtanh.f32 %v402_v37  ;;  %v405_v47 = vadd.f32 %v919_v35, %v1164_v29 }
  0xe0   :  { %v977_v15 = vpop.eup %976  ;;  %v545_v17 = vsel %vm150_vm0, %v481_v7, 0.0  ;;  %v484_v18 = vmul.f32 %v975_v8, %v1181_v53  ;;  %v268_v45 = vpop.f32.mrf.mxu0  ;;  %1002 = vtanh.f32 %v418_v41  ;;  %v421_v51 = vadd.f32 %v935_v38, %v1166_v30 }
  0xe1   :  { %v979_v19 = vpop.eup %978  ;;  %v506_v28 = vsel %vm150_vm0, %v468_v14, 0.0  ;;  %v466_v31 = vmul.f32 %v977_v15, %v1181_v53  ;;  %v332_v48 = vpop.f32.mrf.mxu1  ;;  %1004 = vtanh.f32 %v405_v47  ;;  %v403_v57 = vadd.f32 %v1164_v29, %v268_v45 }
  0xe2   :  { %498 = vadd.xlane.f32.xlu0 %v497_v12  ;;  %v981_v23 = vpop.eup %980  ;;  %v554_v32 = vsel %vm150_vm0, %v484_v18, 0.0  ;;  %v482_v33 = vmul.f32 %v979_v19, %v1181_v53  ;;  %v922_v54 = vpop.f32.mrf.mxu0  ;;  %1006 = vtanh.f32 %v421_v51  ;;  %v419_v61 = vadd.f32 %v1166_v30, %v332_v48 }
  0xe3   :  { %546 = vadd.xlane.f32.xlu1 %v545_v17  ;;  %v983_v26 = vpop.eup %982  ;;  %v471_v34 = vmul.f32 %v981_v23, %v1181_v53  ;;  %v500_v39 = vsel %vm150_vm0, %v466_v31, 0.0  ;;  %v938_v56 = vpop.f32.mrf.mxu1  ;;  %v408_v2 = vadd.f32 %v922_v54, %v1164_v29  ;;  %1008 = vtanh.f32 %v403_v57 }
  0xe4   :  { %v487_v36 = vmul.f32 %v983_v26, %v1181_v53  ;;  %v985_v40 = vpop.eup %984  ;;  %v548_v42 = vsel %vm150_vm0, %v482_v33, 0.0  ;;  %v281_v0 = vpop.f32.mrf.mxu0  ;;  %v424_v5 = vadd.f32 %v938_v56, %v1166_v30  ;;  %1010 = vtanh.f32 %v419_v61 }
  0xe5   :  { %v987_v43 = vpop.eup %986  ;;  %v515_v44 = vsel %vm150_vm0, %v471_v34, 0.0  ;;  %v469_v49 = vmul.f32 %v985_v40, %v1181_v53  ;;  %v345_v3 = vpop.f32.mrf.mxu1  ;;  %1012 = vtanh.f32 %v408_v2  ;;  %v406_v15 = vadd.f32 %v1164_v29, %v281_v0 }
  0xe6   :  { %507 = vadd.xlane.f32.xlu0 %v506_v28  ;;  %v563_v46 = vsel %vm150_vm0, %v487_v36, 0.0  ;;  %v989_v50 = vpop.eup %988  ;;  %v485_v52 = vmul.f32 %v987_v43, %v1181_v53  ;;  %v923_v10 = vpop.f32.mrf.mxu0  ;;  %1014 = vtanh.f32 %v424_v5  ;;  %v422_v18 = vadd.f32 %v1166_v30, %v345_v3 }
  0xe7   :  { %555 = vadd.xlane.f32.xlu1 %v554_v32  ;;  %v991_v55 = vpop.eup %990  ;;  %v509_v58 = vsel %vm150_vm0, %v469_v49, 0.0  ;;  %v472_v59 = vmul.f32 %v989_v50, %v1181_v53  ;;  %v939_v12 = vpop.f32.mrf.mxu1  ;;  %1016 = vtanh.f32 %v406_v15  ;;  %v409_v35 = vadd.f32 %v923_v10, %v1164_v29 }
  0xe8   :  { %v993_v60 = vpop.eup %992  ;;  %v557_v62 = vsel %vm150_vm0, %v485_v52, 0.0  ;;  %v488_v63 = vmul.f32 %v991_v55, %v1181_v53  ;;  %v284_v21 = vpop.f32.mrf.mxu0  ;;  %1018 = vtanh.f32 %v422_v18  ;;  %v1274_v18 = vand.u32 127, %v373_v20 }
  0xe9   :  { %v995_v1 = vpop.eup %994  ;;  %v518_v7 = vsel %vm150_vm0, %v472_v59, 0.0  ;;  %v470_v8 = vmul.f32 %v993_v60, %v1181_v53  ;;  %v348_v24 = vpop.f32.mrf.mxu1  ;;  %v407_v27 = vadd.f32 %v1164_v29, %v284_v21 }
  0xea   :  { %501 = vadd.xlane.f32.xlu0 %v500_v39  ;;  %v997_v4 = vpop.eup %996  ;;  %v566_v9 = vsel %vm150_vm0, %v488_v63, 0.0  ;;  %v486_v11 = vmul.f32 %v995_v1, %v1181_v53  ;;  %v423_v32 = vadd.f32 %v1166_v30, %v348_v24  ;;  %v425_v39 = vadd.f32 %v939_v12, %v1166_v30 }
  0xeb   :  { %549 = vadd.xlane.f32.xlu1 %v548_v42  ;;  %v999_v6 = vpop.eup %998  ;;  %v475_v13 = vmul.f32 %v997_v4, %v1181_v53  ;;  %v512_v16 = vsel %vm150_vm0, %v470_v8, 0.0  ;;  %1020 = vtanh.f32 %v407_v27  ;;  %v633_v21 = vadd.s32 4294967288, %v1274_v18 }
  0xec   :  { %v491_v14 = vmul.f32 %v999_v6, %v1181_v53  ;;  %v1001_v17 = vpop.eup %1000  ;;  %v560_v19 = vsel %vm150_vm0, %v486_v11, 0.0  ;;  %1022 = vtanh.f32 %v423_v32  ;;  %v654_v32 = vadd.s32 4294967264, %v1274_v18 }
  0xed   :  { %v1003_v23 = vpop.eup %1002  ;;  %v527_v25 = vsel %vm150_vm0, %v475_v13, 0.0  ;;  %v473_v28 = vmul.f32 %v1001_v17, %v1181_v53  ;;  %1024 = vtanh.f32 %v409_v35  ;;  %v647_v20 = vadd.s32 4294967272, %v1274_v18 }
  0xee   :  { %516 = vadd.xlane.f32.xlu0 %v515_v44  ;;  %v575_v26 = vsel %vm150_vm0, %v491_v14, 0.0  ;;  %v1005_v31 = vpop.eup %1004  ;;  %v489_v33 = vmul.f32 %v1003_v23, %v1181_v53  ;;  %1026 = vtanh.f32 %v425_v39 }
  0xef   :  { %564 = vadd.xlane.f32.xlu1 %v563_v46  ;;  %v1007_v34 = vpop.eup %1006  ;;  %v521_v36 = vsel %vm150_vm0, %v473_v28, 0.0  ;;  %v476_v37 = vmul.f32 %v1005_v31, %v1181_v53  ;;  %v631_v28 = vsub.s32 %v1274_v18, %v1157_v22 }
  0xf0   :  { %v1009_v38 = vpop.eup %1008  ;;  %v569_v40 = vsel %vm150_vm0, %v489_v33, 0.0  ;;  %v492_v41 = vmul.f32 %v1007_v34, %v1181_v53  ;;  %v661_v34 = vadd.s32 4294967256, %v1274_v18 }
  0xf1   :  { %v1011_v42 = vpop.eup %1010  ;;  %v530_v29 = vsel %vm150_vm0, %v476_v37, 0.0  ;;  %v474_v45 = vmul.f32 %v1009_v38, %v1181_v53 }
  0xf2   :  { %510 = vadd.xlane.f32.xlu0 %v509_v58  ;;  %v1013_v43 = vpop.eup %1012  ;;  %v578_v46 = vsel %vm150_vm0, %v492_v41, 0.0  ;;  %v490_v30 = vmul.f32 %v1011_v42, %v1181_v53  ;;  %v657_v41 = vsub.s32 %v654_v32, %v1157_v22  ;;  %v650_v42 = vsub.s32 %v647_v20, %v1157_v22 }
  0xf3   :  { %558 = vadd.xlane.f32.xlu1 %v557_v62  ;;  %v1015_v44 = vpop.eup %1014  ;;  %v479_v47 = vmul.f32 %v1013_v43, %v1181_v53  ;;  %v524_v49 = vsel %vm150_vm0, %v474_v45, 0.0 }
  0xf4   :  { %v495_v48 = vmul.f32 %v1015_v44, %v1181_v53  ;;  %v1017_v50 = vpop.eup %1016  ;;  %v572_v51 = vsel %vm150_vm0, %v490_v30, 0.0  ;;  %v664_v44 = vsub.s32 %v661_v34, %v1157_v22 }
  0xf5   :  { %v1019_v52 = vpop.eup %1018  ;;  %v539_v54 = vsel %vm150_vm0, %v479_v47, 0.0  ;;  %v477_v56 = vmul.f32 %v1017_v50, %v1181_v53 }
  0xf6   :  { %519 = vadd.xlane.f32.xlu0 %v518_v7  ;;  %v587_v55 = vsel %vm150_vm0, %v495_v48, 0.0  ;;  %v493_v58 = vmul.f32 %v1019_v52, %v1181_v53  ;;  %v675_v48 = vadd.s32 4294967240, %v1274_v18  ;;  %v682_v52 = vadd.s32 4294967232, %v1274_v18 }
  0xf7   :  { %567 = vadd.xlane.f32.xlu1 %v566_v9  ;;  %v533_v60 = vsel %vm150_vm0, %v477_v56, 0.0 }
  0xf8   :  { %v1021_v57 = vpop.eup %1020  ;;  %v581_v63 = vsel %vm150_vm0, %v493_v58, 0.0 }
  0xf9   :  { %v1023_v59 = vpop.eup %1022  ;;  %v478_v61 = vmul.f32 %v1021_v57, %v1181_v53 }
  0xfa   :  { %513 = vadd.xlane.f32.xlu0 %v512_v16  ;;  %v1025_v62 = vpop.eup %1024  ;;  %v494_v0 = vmul.f32 %v1023_v59, %v1181_v53 }
  0xfb   :  { %561 = vadd.xlane.f32.xlu1 %v560_v19  ;;  %v1027_v1 = vpop.eup %1026  ;;  %v536_v2 = vsel %vm150_vm0, %v478_v61, 0.0  ;;  %v480_v3 = vmul.f32 %v1025_v62, %v1181_v53 }
  0xfc   :  { %v584_v4 = vsel %vm150_vm0, %v494_v0, 0.0  ;;  %v496_v5 = vmul.f32 %v1027_v1, %v1181_v53 }
  0xfd   :  { %v542_v6 = vsel %vm150_vm0, %v480_v3, 0.0  ;;  %v678_v3 = vsub.s32 %v675_v48, %v1157_v22 }
  0xfe   :  { %528 = vadd.xlane.f32.xlu0 %v527_v25  ;;  %v590_v7 = vsel %vm150_vm0, %v496_v5, 0.0  ;;  %v636_v25 = vsub.s32 %v633_v21, %v1157_v22  ;;  %vm817_vm0 = vcmask 1041409  }
  0xff   :  { %576 = vadd.xlane.f32.xlu1 %v575_v26  ;;  %v640_v26 = vadd.s32 4294967280, %v1274_v18 }
 0x101   :  { %v643_v35 = vsub.s32 %v640_v26, %v1157_v22 }
 0x102   :  { %522 = vadd.xlane.f32.xlu0 %v521_v36 }
 0x103   :  { %570 = vadd.xlane.f32.xlu1 %v569_v40 }
 0x106   :  { %531 = vadd.xlane.f32.xlu0 %v530_v29 }
 0x107   :  { %579 = vadd.xlane.f32.xlu1 %v578_v46  ;;  %v668_v46 = vadd.s32 4294967248, %v1274_v18 }
 0x10a   :  { %525 = vadd.xlane.f32.xlu0 %v524_v49 }
 0x10b   :  { %573 = vadd.xlane.f32.xlu1 %v572_v51 }
 0x10e   :  { %540 = vadd.xlane.f32.xlu0 %v539_v54  ;;  %v689_v54 = vadd.s32 4294967224, %v1274_v18 }
 0x10f   :  { %588 = vadd.xlane.f32.xlu1 %v587_v55 }
 0x112   :  { %534 = vadd.xlane.f32.xlu0 %v533_v60  ;;  %v671_v60 = vsub.s32 %v668_v46, %v1157_v22  ;;  %v731_v46 = vadd.s32 4294967176, %v1274_v18 }
 0x113   :  { %582 = vadd.xlane.f32.xlu1 %v581_v63 }
 0x116   :  { %537 = vadd.xlane.f32.xlu0 %v536_v2 }
 0x117   :  { %585 = vadd.xlane.f32.xlu1 %v584_v4  ;;  %v685_v4 = vsub.s32 %v682_v52, %v1157_v22 }
 0x11a   :  { %543 = vadd.xlane.f32.xlu0 %v542_v6 }
 0x11b   :  { %591 = vadd.xlane.f32.xlu1 %v590_v7  ;;  %v692_v7 = vsub.s32 %v689_v54, %v1157_v22 }
 0x167   :  { %v505_v8 = vpop.xlane.xlu0 %504 }
 0x168   :  { %v553_v9 = vpop.xlane.xlu1 %552  ;;  %v644_v29 = vrot.slane %v505_v8, %v643_v35 }
 0x169   :  { %v750_v47 = vrot.slane %v553_v9, %v643_v35 }
 0x16b   :  { %v499_v10 = vpop.xlane.xlu0 %498 }
 0x16c   :  { %v547_v11 = vpop.xlane.xlu1 %546  ;;  %v632_v38 = vrot.slane %v499_v10, %v631_v28  ;;  %v696_v10 = vadd.s32 4294967216, %v1274_v18 }
 0x16d   :  { %v741_v40 = vrot.slane %v547_v11, %v631_v28 }
 0x16f   :  { %v508_v12 = vpop.xlane.xlu0 %507 }
 0x170   :  { %v556_v13 = vpop.xlane.xlu1 %555  ;;  %v651_v55 = vrot.slane %v508_v12, %v650_v42 }
 0x171   :  { %v755_v59 = vrot.slane %v556_v13, %v650_v42  ;;  %v724_v42 = vadd.s32 4294967184, %v1274_v18 }
 0x173   :  { %v502_v14 = vpop.xlane.xlu0 %501 }
 0x174   :  { %v550_v15 = vpop.xlane.xlu1 %549  ;;  %v637_v33 = vrot.slane %v502_v14, %v636_v25 }
 0x175   :  { %v745_v36 = vrot.slane %v550_v15, %v636_v25 }
 0x176   :  { %v639_v43 = vsel %vm638_vm1, %v637_v33, %v632_v38  ;;  %v717_v33 = vadd.s32 4294967192, %v1274_v18 }
 0x177   :  { %v1269_v16 = vpop.xlane.xlu0 %516  ;;  %v746_v45 = vsel %vm638_vm1, %v745_v36, %v741_v40  ;;  %v646_v50 = vsel %vm645_vm2, %v644_v29, %v639_v43 }
 0x178   :  { %v1271_v17 = vpop.xlane.xlu1 %564  ;;  %v751_v56 = vsel %vm645_vm2, %v750_v47, %v746_v45  ;;  %v653_v63 = vsel %vm652_vm3, %v651_v55, %v646_v50  ;;  %v672_v8 = vrot.slane %v1269_v16, %v671_v60  ;;  %v720_v45 = vsub.s32 %v717_v33, %v1157_v22 }
 0x179   :  { %v756_v1 = vsel %vm652_vm3, %v755_v59, %v751_v56  ;;  %v770_v12 = vrot.slane %v1271_v17, %v671_v60  ;;  %v699_v17 = vsub.s32 %v696_v10, %v1157_v22  ;;  %v734_v56 = vsub.s32 %v731_v46, %v1157_v22 }
 0x17a   :  { %vm821_vm2 = vcmp.ge.s32.totalorder %v1274_v18, 8  ;;  %vm823_vm3 = vcmask 1041408  }
 0x17b   :  { %v511_v53 = vpop.xlane.xlu0 %510 }
 0x17c   :  { %v559_v19 = vpop.xlane.xlu1 %558  ;;  %v658_v51 = vrot.slane %v511_v53, %v657_v41  ;;  %v703_v53 = vadd.s32 4294967208, %v1274_v18 }
 0x17d   :  { %v760_v57 = vrot.slane %v559_v19, %v657_v41  ;;  %v710_v19 = vadd.s32 4294967200, %v1274_v18 }
 0x17e   :  { %v660_v2 = vsel %vm659_vm4, %v658_v51, %v653_v63  ;;  %v727_v51 = vsub.s32 %v724_v42, %v1157_v22 }
 0x17f   :  { %v1277_v23 = vpop.xlane.xlu0 %519  ;;  %v761_v5 = vsel %vm659_vm4, %v760_v57, %v756_v1  ;;  %v713_v35 = vsub.s32 %v710_v19, %v1157_v22 }
 0x180   :  { %v1279_v24 = vpop.xlane.xlu1 %567  ;;  %v679_v21 = vrot.slane %v1277_v23, %v678_v3 }
 0x183   :  { %v514_v27 = vpop.xlane.xlu0 %513 }
 0x184   :  { %v562_v31 = vpop.xlane.xlu1 %561  ;;  %v665_v58 = vrot.slane %v514_v27, %v664_v44  ;;  %v775_v27 = vrot.slane %v1279_v24, %v678_v3  ;;  %v706_v24 = vsub.s32 %v703_v53, %v1157_v22 }
 0x185   :  { %v765_v61 = vrot.slane %v562_v31, %v664_v44 }
 0x186   :  { %v667_v6 = vsel %vm666_vm5, %v665_v58, %v660_v2 }
 0x187   :  { %v1289_v37 = vpop.xlane.xlu0 %528  ;;  %v766_v9 = vsel %vm666_vm5, %v765_v61, %v761_v5  ;;  %v674_v14 = vsel %vm673_vm6, %v672_v8, %v667_v6 }
 0x188   :  { %v1291_v39 = vpop.xlane.xlu1 %576  ;;  %v771_v16 = vsel %vm673_vm6, %v770_v12, %v766_v9  ;;  %v681_v32 = vsel %vm680_vm7, %v679_v21, %v674_v14  ;;  %v700_v40 = vrot.slane %v1289_v37, %v699_v17 }
 0x189   :  { %v776_v34 = vsel %vm680_vm7, %v775_v27, %v771_v16  ;;  %v790_v44 = vrot.slane %v1291_v39, %v699_v17 }
 0x18b   :  { %v523_v30 = vpop.xlane.xlu0 %522 }
 0x18c   :  { %v571_v49 = vpop.xlane.xlu1 %570  ;;  %v686_v15 = vrot.slane %v523_v30, %v685_v4 }
 0x18d   :  { %v780_v25 = vrot.slane %v571_v49, %v685_v4 }
 0x18e   :  { %v688_v23 = vsel %vm687_vm8, %v686_v15, %v681_v32 }
 0x18f   :  { %v1303_v62 = vpop.xlane.xlu0 %531  ;;  %v781_v36 = vsel %vm687_vm8, %v780_v25, %v776_v34 }
 0x190   :  { %v1306_v0 = vpop.xlane.xlu1 %579  ;;  %v707_v48 = vrot.slane %v1303_v62, %v706_v24 }
 0x191   :  { %v795_v37 = vrot.slane %v1306_v0, %v706_v24  ;;  %v593_v0 = vld [vmem:[%s1351_s4] sm:$0x3]  ;;  %s1055_s4 = smov [#allocation2]  }
 0x192   :  { %vm594_vm1 = vcmp.eq.s32.totalorder %v593_v0, 0  ;;  %s842_s30 = sshll.u32 %s1055_s4, 4  ;;  %s843_s30 = int_to_ptr.vmem [resolvable:$true] %s842_s30 }
 0x193   :  { %v526_v11 = vpop.xlane.xlu0 %525  ;;  %s1032_s6 = scalar_lea.vmem %s843_s30, 32  ;;  %p1037_p1 = scmp.lt.s32.totalorder %s843_s30, %s843_s30 }
 0x194   :  { %v574_v13 = vpop.xlane.xlu1 %573  ;;  %v693_v26 = vrot.slane %v526_v11, %v692_v7  ;;  %p1033_p0 = scmp.ne.s32.totalorder %s843_s30, %s1032_s6  ;;  %p1038_p2 = scmp.lt.s32.totalorder %s1032_s6, %s1032_s6 }
 0x195   :  { %v785_v28 = vrot.slane %v574_v13, %v692_v7 }
 0x196   :  { %v695_v38 = vsel %vm694_vm9, %v693_v26, %v688_v23  ;;  %p1039_p3 = por %p1038_p2, %p1037_p1 }
 0x197   :  { %v541_v31 = vpop.xlane.xlu0 %540  ;;  %v786_v41 = vsel %vm694_vm9, %v785_v28, %v781_v36  ;;  %v702_v30 = vsel %vm701_vm10, %v700_v40, %v695_v38 }
 0x198   :  { %v589_v20 = vpop.xlane.xlu1 %588  ;;  %v791_v49 = vsel %vm701_vm10, %v790_v44, %v786_v41  ;;  %v709_v39 = vsel %vm708_vm11, %v707_v48, %v702_v30  ;;  %v728_v62 = vrot.slane %v541_v31, %v727_v51  ;;  %p1040_p4 = pnand %p1039_p3, %p1033_p0 }
 0x199   :  { %v796_v57 = vsel %vm708_vm11, %v795_v37, %v791_v49  ;;  %v810_v2 = vrot.slane %v589_v20, %v727_v51 }
 0x19b   :  { %v535_v43 = vpop.xlane.xlu0 %534 }
 0x19c   :  { %v583_v29 = vpop.xlane.xlu1 %582  ;;  %v714_v47 = vrot.slane %v535_v43, %v713_v35 }
 0x19d   :  { %v800_v50 = vrot.slane %v583_v29, %v713_v35 }
 0x19e   :  { %v716_v58 = vsel %vm715_vm12, %v714_v47, %v709_v39 }
 0x19f   :  { %v538_v52 = vpop.xlane.xlu0 %537  ;;  %v801_v60 = vsel %vm715_vm12, %v800_v50, %v796_v57 }
 0x1a0   :  { %v586_v54 = vpop.xlane.xlu1 %585  ;;  %v721_v55 = vrot.slane %v538_v52, %v720_v45 }
 0x1a1   :  { %v805_v59 = vrot.slane %v586_v54, %v720_v45 }
 0x1a2   :  { %v723_v61 = vsel %vm722_vm13, %v721_v55, %v716_v58 }
 0x1a3   :  { %v806_v63 = vsel %vm722_vm13, %v805_v59, %v801_v60  ;;  %v544_v1 = vpop.xlane.xlu0 %543  ;;  %v730_v6 = vsel %vm729_vm14, %v728_v62, %v723_v61 }
 0x1a4   :  { %v592_v3 = vpop.xlane.xlu1 %591  ;;  %v735_v4 = vrot.slane %v544_v1, %v734_v56  ;;  %v811_v22 = vsel %vm729_vm14, %v810_v2, %v806_v63 }
 0x1a5   :  { %v815_v5 = vrot.slane %v592_v3, %v734_v56 }
 0x1a6   :  { %v737_v7 = vsel %vm736_vm15, %v735_v4, %v730_v6 }
 0x1a7   :  { %v816_v8 = vsel %vm736_vm15, %v815_v5, %v811_v22 }
 0x1a8   :  { %v818_v9 = vsel %vm817_vm0, %v816_v8, %v737_v7 }
 0x1a9   :  { %v820_v10 = vsel %vm594_vm1, -1e+10, %v818_v9 }
 0x1aa   :  { %v822_v11 = vsel %vm821_vm2, -inf, %v820_v10 }
 0x1ab   :  { %v824_v12 = vsel %vm823_vm3, %v822_v11, -inf }
 0x1ac   :  { %825 = vmax.xlane.f32.xlu0 %v824_v12 }
 0x235   :  { %v826_v13 = vpop.xlane.xlu0 %825 }
 0x236   :  { %v827_v14 = vsub.f32 %v822_v11, %v826_v13 }
 0x238   :  { %v828_v15 = vmul.f32 1.442695, %v827_v14 }
 0x23a   :  { %1028 = vpow2.f32 %v828_v15 }
 0x247   :  { %v1029_v53 = vpop.eup %1028 }
 0x248   :  { %v830_v19 = vsel %vm823_vm3, %v1029_v53, 0.0 }
 0x249   :  { %831 = vadd.xlane.f32.xlu1 %v830_v19 }
 0x2d2   :  { %v832_v21 = vpop.xlane.xlu1 %831 }
 0x2d3   :  { %1030 = vrcp.f32 %v832_v21 }
 0x2e0   :  { %v1031_v16 = vpop.eup %1030 }
 0x2e1   :  { %v834_v25 = vmul.f32 %v1031_v16, %v1029_v53 }
 0x2e3   :  { %835 = vst [vmem:[#allocation2] sm:$0x3] %v834_v25 }
 0x2e4   :  { %1043 = shalt.err (!%p1040_p4)
}
 0x2e5   :  { %845 = dma.vmem_to_hbm [thread:$0]  %s843_s30, 32, %s1352_s5, [#allocation3]  }
 0x2e6   :  { %1052 = dma.done.wait [#allocation3], 32  }
 0x2e7   :  { %1053 = vsyncadd [#allocation3], 4294967264 }
 0x2e8   :  { %849 = vsyncpa [#allocation3], 1 }

</bundles_post_ra>
